<compile_context>
chip_gen: v7x
topology: tpu7x:2x2x1
jax: 0.10.0
libtpu: 0.0.40
codegen_flags: <defaults>
</compile_context>

<pallas_src>
import functools

import numpy as np
import jax
import jax.numpy as jnp
from jax import lax
from jax.experimental import pallas as pl
from jax.experimental.pallas import tpu as pltpu

# ---------------- LMFLoss hyper-parameters (match the PyTorch defaults) -------
ALPHA = 0.2       # weight on focal loss
BETA = 0.2        # weight on LDAM loss
GAMMA = 2         # focal gamma (== 2 -> explicit multiply, no pow lowering)
MAX_M = 0.8       # LDAM max margin
S = 5.0           # LDAM logit scale
CLS_NUM_LIST = [50, 20, 10, 5]   # synthetic per-class counts (C = 4 classes)
C = len(CLS_NUM_LIST)
ALPHA_T = 1.0 / C                # focal alpha = 1/classnum per class


def _make_m_list(cls_num_list, max_m):
    m = 1.0 / np.sqrt(np.sqrt(np.asarray(cls_num_list, dtype=np.float64)))
    m = m * (max_m / np.max(m))
    return [float(v) for v in m.astype(np.float32)]


M_LIST = _make_m_list(CLS_NUM_LIST, MAX_M)
SM_LIST = [S * m for m in M_LIST]        # per-class S*margin, compile-time consts

LANES = 128
ROW_ALIGN = 32            # int8 native sublane tile -> keep blocks 32-row aligned
MAX_BLOCK_ROWS = 4096     # 4096 rows * 32 samples/row = 131072 samples per step


def _group_sum(v):
    """Sum over each aligned 4-lane group; correct at lanes where lane % 4 == 0."""
    s = v + pltpu.roll(v, shift=LANES - 1, axis=1)      # v[i] + v[i+1]
    return s + pltpu.roll(s, shift=LANES - 2, axis=1)   # ... + v[i+2] + v[i+3]


def _lmf_kernel(x_ref, oh_ref, o_ref, *, n_valid_flat, block_rows):
    x = x_ref[...].astype(jnp.float32)        # (TR, 128) logits, fully dense
    oh = oh_ref[...].astype(jnp.float32)      # (TR, 128) one-hot (0/1), int8 in HBM

    lane = lax.broadcasted_iota(jnp.int32, x.shape, 1)
    row = lax.broadcasted_iota(jnp.int32, x.shape, 0)
    cls = lane & 3                            # class id of each lane
    is_lead = cls == 0                        # one anchor lane per sample

    # ---- per-sample max over the 4 class lanes, broadcast back to the group ----
    m1 = jnp.maximum(x, pltpu.roll(x, shift=LANES - 1, axis=1))
    m2 = jnp.maximum(m1, pltpu.roll(m1, shift=LANES - 2, axis=1))   # max @ leads
    g = jnp.where(is_lead, m2, -jnp.inf)
    b1 = jnp.maximum(g, pltpu.roll(g, shift=1, axis=1))
    xmax = jnp.maximum(b1, pltpu.roll(b1, shift=2, axis=1))         # max @ all lanes

    # ---- focal branch: softmax stats; pt reuses the same exponentials ----
    e = jnp.exp(x - xmax)                     # 4 useful exps / sample
    se = _group_sum(e)                        # sum_c exp(x_c - max)     @ leads
    et = _group_sum(e * oh)                   # exp(x_target - max)      @ leads

    # ---- LDAM branch: margin as a compile-time per-lane constant * one-hot ----
    sm_lane = jnp.where(cls == 0, SM_LIST[0],
              jnp.where(cls == 1, SM_LIST[1],
              jnp.where(cls == 2, SM_LIST[2], SM_LIST[3]))).astype(jnp.float32)
    z = S * (x - xmax) - sm_lane * oh         # z_c - S*xmax  (S*xmax >= max_c z_c)
    zt = _group_sum(z * oh)                   # z_target - S*xmax        @ leads
    ez = jnp.exp(z)
    se2 = _group_sum(ez)                      # sum_c exp(z_c - S*xmax)  @ leads

    # ---- per-sample losses at the anchor lanes, one fused reduction ----
    pt = et / se
    ce = -jnp.log(pt)                         # = logsumexp(x) - x_target
    ce2 = jnp.log(se2) - zt                   # = logsumexp(z) - z_target
    per_sample = (ALPHA * ALPHA_T) * (1.0 - pt) * (1.0 - pt) * ce + BETA * ce2

    flat = (pl.program_id(0) * block_rows + row) * LANES + lane
    mask = is_lead & (flat < n_valid_flat)    # real (non-padded) samples only
    partial = jnp.sum(jnp.where(mask, per_sample, 0.0))

    # Full-tile splat store (unmasked, lane-dense); wrapper reads [i, 0, 0].
    o_ref[...] = jnp.full(o_ref.shape, partial, jnp.float32)


def _round_up(v, m):
    return -(-v // m) * m


def lmf_loss(x, target, *, max_block_rows=MAX_BLOCK_ROWS):
    """x: (N, C) float logits; target: (N,) int class ids.  Returns scalar f32."""
    n, c = x.shape
    assert c == C, f"expected {C} classes, got {c}"
    if n == 0:
        return jnp.float32(0.0)

    flat_elems = n * c
    rows = _round_up(max(-(-flat_elems // LANES), 1), ROW_ALIGN)
    # Adaptive block: big blocks (up to ~128K samples) to amortize per-step
    # overhead, >= 2 steps when possible (v7x: 2 TensorCores), minimal tail pad.
    min_steps = 2 if rows > ROW_ALIGN else 1
    steps = max(-(-rows // max_block_rows), min_steps)
    block_rows = _round_up(-(-rows // steps), ROW_ALIGN)
    grid = -(-rows // block_rows)
    rows_pad = grid * block_rows

    # Free flat view of the contiguous (N, C) logits; int8 one-hot targets in the
    # identical layout (4 B/sample).  Only the (small) tail is ever padded.
    xf = x.reshape(flat_elems)
    ohf = jax.nn.one_hot(target.astype(jnp.int32), c, dtype=jnp.int8).reshape(flat_elems)
    pad = rows_pad * LANES - flat_elems
    if pad:
        xf = jnp.pad(xf, (0, pad))
        ohf = jnp.pad(ohf, (0, pad))
    x2 = xf.reshape(rows_pad, LANES)
    oh2 = ohf.reshape(rows_pad, LANES)

    kernel = functools.partial(_lmf_kernel, n_valid_flat=flat_elems,
                               block_rows=block_rows)
    partials = pl.pallas_call(
        kernel,
        out_shape=jax.ShapeDtypeStruct((grid, 8, LANES), jnp.float32),
        grid=(grid,),
        in_specs=[
            pl.BlockSpec((block_rows, LANES), lambda i: (i, 0)),   # logits view
            pl.BlockSpec((block_rows, LANES), lambda i: (i, 0)),   # int8 one-hot
        ],
        out_specs=pl.BlockSpec((1, 8, LANES), lambda i: (i, 0, 0)),
        compiler_params=pltpu.CompilerParams(
            dimension_semantics=("parallel",),        # independent partial sums
            vmem_limit_bytes=48 * 1024 * 1024,        # headroom for 4096-row blocks
        ),
    )(x2, oh2)

    # Tiny finalize in plain JAX: sum of per-tile partials, then mean over N.
    return jnp.sum(partials[:, 0, 0]) / n


def _lmf_loss_ref(x, target):
    """Pure-JAX reference matching the PyTorch LMFLoss forward."""
    n, c = x.shape
    onehot = jax.nn.one_hot(target, c, dtype=jnp.float32)
    m_list = jnp.asarray(M_LIST, dtype=jnp.float32)

    # focal (alpha = 1/C per class, gamma = GAMMA, mean reduction)
    logsm = jax.nn.log_softmax(x, axis=1)
    logpt = jnp.take_along_axis(logsm, target[:, None], axis=1)[:, 0]
    ce = -logpt
    pt = jnp.exp(logpt)
    focal = jnp.mean((1.0 / c) * (1.0 - pt) ** GAMMA * ce)

    # LDAM
    batch_m = m_list[target][:, None]
    out = jnp.where(onehot > 0.5, x - batch_m, x)
    z = S * out
    ldam = jnp.mean(-jnp.take_along_axis(jax.nn.log_softmax(z, axis=1),
                                         target[:, None], axis=1)[:, 0])
    return ALPHA * focal + BETA * ldam


if __name__ == "__main__":
    key = jax.random.PRNGKey(0)
    kx, kt = jax.random.split(key)

    # Small case (single block).
    N = 8
    x = jax.random.normal(kx, (N, C), dtype=jnp.float32)
    target = jax.random.randint(kt, (N,), 0, C, dtype=jnp.int32)
    loss = jax.jit(lmf_loss)(x, target)
    jax.block_until_ready(loss)
    ref = _lmf_loss_ref(x, target)
    assert jnp.allclose(loss, ref, rtol=1e-5, atol=1e-5), (loss, ref)

    # Larger case: exercises the multi-block grid and the ragged-tail masking.
    kx2, kt2 = jax.random.split(kt)
    N2 = 5000
    x_big = jax.random.normal(kx2, (N2, C), dtype=jnp.float32)
    t_big = jax.random.randint(kt2, (N2,), 0, C, dtype=jnp.int32)
    loss_big = jax.jit(lmf_loss)(x_big, t_big)
    jax.block_until_ready(loss_big)
    ref_big = _lmf_loss_ref(x_big, t_big)
    assert jnp.allclose(loss_big, ref_big, rtol=1e-5, atol=1e-5), (loss_big, ref_big)

    print("KERNEL_OK")
</pallas_src>

<mosaic_0001>
module attributes {stable_mosaic.version = 11 : i64} {
  func.func @_lmf_kernel(%arg0: i32, %arg1: memref<32x128xf32, #tpu.memory_space<vmem>>, %arg2: memref<32x128xi8, #tpu.memory_space<vmem>>, %arg3: memref<1x8x128xf32, #tpu.memory_space<vmem>>) attributes {dimension_semantics = [#tpu.dimension_semantics<parallel>], iteration_bounds = array<i64: 1>, scalar_prefetch = 0 : i64, scratch_operands = 0 : i64, tpu.core_type = #tpu.core_type<tc>, window_params = [{transform_indices = @transform_0, window_bounds = array<i64: 32, 128>}, {transform_indices = @transform_1, window_bounds = array<i64: 32, 128>}, {transform_indices = @transform_2, window_bounds = array<i64: 1, 8, 128>}]} {
    %c0 = arith.constant 0 : index
    %c0_0 = arith.constant 0 : index
    %0 = vector.load %arg1[%c0, %c0_0] : memref<32x128xf32, #tpu.memory_space<vmem>>, vector<32x128xf32>
    %c0_1 = arith.constant 0 : index
    %c0_2 = arith.constant 0 : index
    %1 = vector.load %arg2[%c0_1, %c0_2] : memref<32x128xi8, #tpu.memory_space<vmem>>, vector<32x128xi8>
    %2 = arith.sitofp %1 : vector<32x128xi8> to vector<32x128xf32>
    %3 = tpu.iota {dimensions = array<i32: 1>} : vector<32x128xi32>
    %4 = tpu.iota {dimensions = array<i32: 0>} : vector<32x128xi32>
    %c3_i32 = arith.constant 3 : i32
    %5 = vector.broadcast %c3_i32 : i32 to vector<32x128xi32>
    %6 = arith.andi %3, %5 : vector<32x128xi32>
    %c0_i32 = arith.constant 0 : i32
    %7 = vector.broadcast %c0_i32 : i32 to vector<32x128xi32>
    %8 = arith.cmpi eq, %6, %7 : vector<32x128xi32>
    %c127_i32 = arith.constant 127 : i32
    %9 = tpu.dynamic_rotate %0 by %c127_i32 dim 1 : vector<32x128xf32>, i32 -> vector<32x128xf32>
    %10 = arith.maximumf %0, %9 : vector<32x128xf32>
    %c126_i32 = arith.constant 126 : i32
    %11 = tpu.dynamic_rotate %10 by %c126_i32 dim 1 : vector<32x128xf32>, i32 -> vector<32x128xf32>
    %12 = arith.maximumf %10, %11 : vector<32x128xf32>
    %cst = arith.constant 0xFF800000 : f32
    %13 = vector.broadcast %cst : f32 to vector<32x128xf32>
    %14 = arith.select %8, %12, %13 : vector<32x128xi1>, vector<32x128xf32>
    %c1_i32 = arith.constant 1 : i32
    %15 = tpu.dynamic_rotate %14 by %c1_i32 dim 1 : vector<32x128xf32>, i32 -> vector<32x128xf32>
    %16 = arith.maximumf %14, %15 : vector<32x128xf32>
    %c2_i32 = arith.constant 2 : i32
    %17 = tpu.dynamic_rotate %16 by %c2_i32 dim 1 : vector<32x128xf32>, i32 -> vector<32x128xf32>
    %18 = arith.maximumf %16, %17 : vector<32x128xf32>
    %19 = arith.subf %0, %18 : vector<32x128xf32>
    %20 = math.exp %19 : vector<32x128xf32>
    %c127_i32_3 = arith.constant 127 : i32
    %21 = tpu.dynamic_rotate %20 by %c127_i32_3 dim 1 : vector<32x128xf32>, i32 -> vector<32x128xf32>
    %22 = arith.addf %20, %21 : vector<32x128xf32>
    %c126_i32_4 = arith.constant 126 : i32
    %23 = tpu.dynamic_rotate %22 by %c126_i32_4 dim 1 : vector<32x128xf32>, i32 -> vector<32x128xf32>
    %24 = arith.addf %22, %23 : vector<32x128xf32>
    %25 = arith.mulf %20, %2 : vector<32x128xf32>
    %c127_i32_5 = arith.constant 127 : i32
    %26 = tpu.dynamic_rotate %25 by %c127_i32_5 dim 1 : vector<32x128xf32>, i32 -> vector<32x128xf32>
    %27 = arith.addf %25, %26 : vector<32x128xf32>
    %c126_i32_6 = arith.constant 126 : i32
    %28 = tpu.dynamic_rotate %27 by %c126_i32_6 dim 1 : vector<32x128xf32>, i32 -> vector<32x128xf32>
    %29 = arith.addf %27, %28 : vector<32x128xf32>
    %c0_i32_7 = arith.constant 0 : i32
    %30 = vector.broadcast %c0_i32_7 : i32 to vector<32x128xi32>
    %31 = arith.cmpi eq, %6, %30 : vector<32x128xi32>
    %c1_i32_8 = arith.constant 1 : i32
    %32 = vector.broadcast %c1_i32_8 : i32 to vector<32x128xi32>
    %33 = arith.cmpi eq, %6, %32 : vector<32x128xi32>
    %c2_i32_9 = arith.constant 2 : i32
    %34 = vector.broadcast %c2_i32_9 : i32 to vector<32x128xi32>
    %35 = arith.cmpi eq, %6, %34 : vector<32x128xi32>
    %cst_10 = arith.constant 3.36358571 : f32
    %cst_11 = arith.constant 4.000000e+00 : f32
    %36 = vector.broadcast %cst_10 : f32 to vector<32x128xf32>
    %37 = vector.broadcast %cst_11 : f32 to vector<32x128xf32>
    %38 = arith.select %35, %36, %37 : vector<32x128xi1>, vector<32x128xf32>
    %cst_12 = arith.constant 2.82842731 : f32
    %39 = vector.broadcast %cst_12 : f32 to vector<32x128xf32>
    %40 = arith.select %33, %39, %38 : vector<32x128xi1>, vector<32x128xf32>
    %cst_13 = arith.constant 2.24936533 : f32
    %41 = vector.broadcast %cst_13 : f32 to vector<32x128xf32>
    %42 = arith.select %31, %41, %40 : vector<32x128xi1>, vector<32x128xf32>
    %43 = arith.subf %0, %18 : vector<32x128xf32>
    %cst_14 = arith.constant 5.000000e+00 : f32
    %44 = vector.broadcast %cst_14 : f32 to vector<32x128xf32>
    %45 = arith.mulf %44, %43 : vector<32x128xf32>
    %46 = arith.mulf %42, %2 : vector<32x128xf32>
    %47 = arith.subf %45, %46 : vector<32x128xf32>
    %48 = arith.mulf %47, %2 : vector<32x128xf32>
    %c127_i32_15 = arith.constant 127 : i32
    %49 = tpu.dynamic_rotate %48 by %c127_i32_15 dim 1 : vector<32x128xf32>, i32 -> vector<32x128xf32>
    %50 = arith.addf %48, %49 : vector<32x128xf32>
    %c126_i32_16 = arith.constant 126 : i32
    %51 = tpu.dynamic_rotate %50 by %c126_i32_16 dim 1 : vector<32x128xf32>, i32 -> vector<32x128xf32>
    %52 = arith.addf %50, %51 : vector<32x128xf32>
    %53 = math.exp %47 : vector<32x128xf32>
    %c127_i32_17 = arith.constant 127 : i32
    %54 = tpu.dynamic_rotate %53 by %c127_i32_17 dim 1 : vector<32x128xf32>, i32 -> vector<32x128xf32>
    %55 = arith.addf %53, %54 : vector<32x128xf32>
    %c126_i32_18 = arith.constant 126 : i32
    %56 = tpu.dynamic_rotate %55 by %c126_i32_18 dim 1 : vector<32x128xf32>, i32 -> vector<32x128xf32>
    %57 = arith.addf %55, %56 : vector<32x128xf32>
    %58 = arith.divf %29, %24 : vector<32x128xf32>
    %59 = math.log %58 : vector<32x128xf32>
    %cst_19 = arith.constant 0.000000e+00 : f32
    %60 = vector.broadcast %cst_19 : f32 to vector<32x128xf32>
    %61 = arith.subf %60, %59 : vector<32x128xf32>
    %62 = math.log %57 : vector<32x128xf32>
    %63 = arith.subf %62, %52 : vector<32x128xf32>
    %cst_20 = arith.constant 1.000000e+00 : f32
    %64 = vector.broadcast %cst_20 : f32 to vector<32x128xf32>
    %65 = arith.subf %64, %58 : vector<32x128xf32>
    %cst_21 = arith.constant 5.000000e-02 : f32
    %66 = vector.broadcast %cst_21 : f32 to vector<32x128xf32>
    %67 = arith.mulf %66, %65 : vector<32x128xf32>
    %cst_22 = arith.constant 1.000000e+00 : f32
    %68 = vector.broadcast %cst_22 : f32 to vector<32x128xf32>
    %69 = arith.subf %68, %58 : vector<32x128xf32>
    %70 = arith.mulf %67, %69 : vector<32x128xf32>
    %71 = arith.mulf %70, %61 : vector<32x128xf32>
    %cst_23 = arith.constant 2.000000e-01 : f32
    %72 = vector.broadcast %cst_23 : f32 to vector<32x128xf32>
    %73 = arith.mulf %72, %63 : vector<32x128xf32>
    %74 = arith.addf %71, %73 : vector<32x128xf32>
    %c32_i32 = arith.constant 32 : i32
    %75 = arith.muli %arg0, %c32_i32 : i32
    %76 = vector.broadcast %75 : i32 to vector<32x128xi32>
    %77 = arith.addi %76, %4 : vector<32x128xi32>
    %c128_i32 = arith.constant 128 : i32
    %78 = vector.broadcast %c128_i32 : i32 to vector<32x128xi32>
    %79 = arith.muli %77, %78 : vector<32x128xi32>
    %80 = arith.addi %79, %3 : vector<32x128xi32>
    %c32_i32_24 = arith.constant 32 : i32
    %81 = vector.broadcast %c32_i32_24 : i32 to vector<32x128xi32>
    %82 = arith.cmpi slt, %80, %81 : vector<32x128xi32>
    %83 = arith.andi %8, %82 : vector<32x128xi1>
    %cst_25 = arith.constant 0.000000e+00 : f32
    %84 = vector.broadcast %cst_25 : f32 to vector<32x128xf32>
    %85 = arith.select %83, %74, %84 : vector<32x128xi1>, vector<32x128xf32>
    %86 = vector.shape_cast %85 : vector<32x128xf32> to vector<1x32x128xf32>
    %cst_26 = arith.constant dense<0.000000e+00> : vector<1xf32>
    %87 = vector.multi_reduction <add>, %86, %cst_26 [1, 2] : vector<1x32x128xf32> to vector<1xf32>
    %88 = vector.shape_cast %87 : vector<1xf32> to vector<1x1x1xf32>
    %89 = vector.extract %88[0, 0, 0] : f32 from vector<1x1x1xf32>
    %90 = vector.broadcast %89 : f32 to vector<1x8x128xf32>
    %c0_27 = arith.constant 0 : index
    %c0_28 = arith.constant 0 : index
    %c0_29 = arith.constant 0 : index
    %91 = vector.load %arg3[%c0_27, %c0_28, %c0_29] : memref<1x8x128xf32, #tpu.memory_space<vmem>>, vector<1x8x128xf32>
    tpu.vector_store %arg3[%c0_27, %c0_28, %c0_29], %90 {strides = array<i32>} : memref<1x8x128xf32, #tpu.memory_space<vmem>>, vector<1x8x128xf32>,
    return
  }
  func.func @transform_0(%arg0: i32) -> (i32, i32) {
    %c0_i32 = arith.constant 0 : i32
    %c0_i32_0 = arith.constant 0 : i32
    return %arg0, %c0_i32 : i32, i32
  }
  func.func @transform_1(%arg0: i32) -> (i32, i32) {
    %c0_i32 = arith.constant 0 : i32
    %c0_i32_0 = arith.constant 0 : i32
    return %arg0, %c0_i32 : i32, i32
  }
  func.func @transform_2(%arg0: i32) -> (i32, i32, i32) {
    %c0_i32 = arith.constant 0 : i32
    %c0_i32_0 = arith.constant 0 : i32
    %c0_i32_1 = arith.constant 0 : i32
    return %arg0, %c0_i32, %c0_i32_0 : i32, i32, i32
  }
}

</mosaic_0001>

<bundles_post_ra>
// kernel: lmf_loss.1
= control target key start
LH: loop header
LB: loop body
LE: loop exit
PB: predicated region body
PF: predicated region fallthrough
CT: control target
= control target key end

     0   :  { %s373_s13 = smov 127   ;;  %s374_s18 = smov 126   ;;  %v24_v12 = vlaneseq  ;;  %v377_v39 = vmov 4.0   ;;  %s535_s0 = inlined_call_operand.vmem [shape: f32[32,128], index: 0, kind: input, shape index: {}]   ;;  %s536_s1 = inlined_call_operand.vmem [shape: s8[32,128], index: 1, kind: input, shape index: {}]   ;;  %s537_s2 = inlined_call_operand.vmem [shape: f32[1,8,128], index: 2, kind: output, shape index: {}]  }
   0x1   :  { %v11_v0 = vld [vmem:[%s535_s0] sm:$0xff]  ;;  %v399_v1 = vld [vmem:[%s535_s0 + $0x10] sm:$0xff]  ;;  %v407_v2 = vld [vmem:[%s535_s0 + $0x8] sm:$0xff]  ;;  %s376_s19 = smov 2  }
   0x2   :  { %33 = vrot.lane.b32.xlu0 %v11_v0, %s373_s13  ;;  %37 = vrot.lane.b32.xlu1 %v399_v1, %s373_s13  ;;  %v412_v3 = vld [vmem:[%s535_s0 + $0x18] sm:$0xff]  ;;  %v426_v13 = vand.u32 127, %v24_v12  ;;  %s375_s0 = smov 1   ;;  %v15_v38 = vld [vmem:[%s536_s1] sm:$0xff] }
   0x3   :  { %v17_v44 = vunpack.c.1.s8 %v15_v38  ;;  %v16_v49 = vunpack.c.0.s8 %v15_v38  ;;  %v18_v51 = vunpack.c.2.s8 %v15_v38  ;;  %v19_v63 = vunpack.c.3.s8 %v15_v38 }
   0x4   :  { %v429_v14 = vand.u32 3, %v426_v13 }
   0x5   :  { %v21_v53 = vcvt.s32.f32 %v17_v44  ;;  %v20_v58 = vcvt.s32.f32 %v16_v49  ;;  %v22_v59 = vcvt.s32.f32 %v18_v51 }
   0x6   :  { %35 = vrot.lane.b32.xlu0 %v407_v2, %s373_s13  ;;  %39 = vrot.lane.b32.xlu1 %v412_v3, %s373_s13  ;;  %vm32_vm0 = vcmp.eq.s32.totalorder %v429_v14, 0  ;;  %vm150_vm1 = vcmp.eq.s32.totalorder %v429_v14, 2  ;;  %vm149_vm2 = vcmp.eq.s32.totalorder %v429_v14, 1 }
   0x7   :  { %v151_v40 = vsel %vm150_vm1, 3.3635857, %v377_v39 }
   0x8   :  { %v152_v50 = vsel %vm149_vm2, 2.8284273, %v151_v40 }
   0x9   :  { %v153_v57 = vsel %vm32_vm0, 2.2493653, %v152_v50 }
   0xa   :  { %v159_v61 = vmul.f32 %v153_v57, %v21_v53 }
  0x74   :  { %v34_v4 = vpop.permute.xlu0 %33  ;;  %v38_v5 = vpop.permute.xlu1 %37 }
  0x75   :  { %v41_v6 = vmax.f32 %v11_v0, %v34_v4  ;;  %v43_v7 = vmax.f32 %v399_v1, %v38_v5  ;;  %v160_v4 = vmul.f32 %v153_v57, %v22_v59 }
  0x77   :  { %45 = vrot.lane.b32.xlu0 %v41_v6, %s374_s18 }
  0x78   :  { %v36_v8 = vpop.permute.xlu0 %35  ;;  %v40_v9 = vpop.permute.xlu1 %39 }
  0x79   :  { %v42_v10 = vmax.f32 %v407_v2, %v36_v8  ;;  %v44_v11 = vmax.f32 %v412_v3, %v40_v9  ;;  %v23_v8 = vcvt.s32.f32 %v19_v63 }
  0x7b   :  { %49 = vrot.lane.b32.xlu0 %v43_v7, %s374_s18  ;;  %47 = vrot.lane.b32.xlu1 %v42_v10, %s374_s18 }
  0x7f   :  { %51 = vrot.lane.b32.xlu1 %v44_v11, %s374_s18 }
  0xe9   :  { %v46_v15 = vpop.permute.xlu0 %45 }
  0xea   :  { %v53_v16 = vmax.f32 %v41_v6, %v46_v15  ;;  %v161_v15 = vmul.f32 %v153_v57, %v23_v8 }
  0xec   :  { %v57_v17 = vsel %vm32_vm0, %v53_v16, -inf }
  0xed   :  { %v48_v18 = vpop.permute.xlu1 %47  ;;  %61 = vrot.lane.b32.xlu0 %v57_v17, %s375_s0  ;;  %v50_v19 = vpop.permute.xlu0 %49 }
  0xee   :  { %v54_v20 = vmax.f32 %v42_v10, %v48_v18  ;;  %v55_v21 = vmax.f32 %v43_v7, %v50_v19 }
  0xf0   :  { %v58_v22 = vsel %vm32_vm0, %v54_v20, -inf  ;;  %v59_v23 = vsel %vm32_vm0, %v55_v21, -inf }
  0xf1   :  { %63 = vrot.lane.b32.xlu1 %v58_v22, %s375_s0  ;;  %v52_v24 = vpop.permute.xlu1 %51  ;;  %65 = vrot.lane.b32.xlu0 %v59_v23, %s375_s0 }
  0xf2   :  { %v56_v25 = vmax.f32 %v44_v11, %v52_v24 }
  0xf4   :  { %v60_v26 = vsel %vm32_vm0, %v56_v25, -inf }
  0xf5   :  { %67 = vrot.lane.b32.xlu1 %v60_v26, %s375_s0 }
 0x15f   :  { %v62_v27 = vpop.permute.xlu0 %61 }
 0x160   :  { %v69_v28 = vmax.f32 %v57_v17, %v62_v27 }
 0x162   :  { %73 = vrot.lane.b32.xlu0 %v69_v28, %s376_s19 }
 0x163   :  { %v64_v29 = vpop.permute.xlu1 %63  ;;  %v66_v30 = vpop.permute.xlu0 %65 }
 0x164   :  { %v70_v31 = vmax.f32 %v58_v22, %v64_v29  ;;  %v71_v32 = vmax.f32 %v59_v23, %v66_v30 }
 0x166   :  { %75 = vrot.lane.b32.xlu1 %v70_v31, %s376_s19  ;;  %77 = vrot.lane.b32.xlu0 %v71_v32, %s376_s19 }
 0x167   :  { %v68_v33 = vpop.permute.xlu1 %67 }
 0x168   :  { %v72_v34 = vmax.f32 %v60_v26, %v68_v33 }
 0x16a   :  { %79 = vrot.lane.b32.xlu1 %v72_v34, %s376_s19 }
 0x1d4   :  { %v74_v35 = vpop.permute.xlu0 %73 }
 0x1d5   :  { %v81_v36 = vmax.f32 %v69_v28, %v74_v35 }
 0x1d7   :  { %v85_v37 = vsub.f32 %v11_v0, %v81_v36 }
 0x1d8   :  { %v76_v41 = vpop.permute.xlu1 %75  ;;  %v78_v42 = vpop.permute.xlu0 %77 }
 0x1d9   :  { %v89_v43 = vmul.f32 1.442695, %v85_v37  ;;  %v82_v45 = vmax.f32 %v70_v31, %v76_v41  ;;  %v83_v46 = vmax.f32 %v71_v32, %v78_v42 }
 0x1db   :  { %333 = vpow2.f32 %v89_v43  ;;  %v86_v47 = vsub.f32 %v407_v2, %v82_v45  ;;  %v87_v48 = vsub.f32 %v399_v1, %v83_v46  ;;  %v158_v1 = vmul.f32 %v153_v57, %v20_v58 }
 0x1dc   :  { %v80_v52 = vpop.permute.xlu1 %79  ;;  %v154_v2 = vmul.f32 5.0, %v85_v37 }
 0x1dd   :  { %v91_v54 = vmul.f32 1.442695, %v86_v47  ;;  %v93_v55 = vmul.f32 1.442695, %v87_v48  ;;  %v84_v56 = vmax.f32 %v72_v34, %v80_v52  ;;  %v155_v62 = vmul.f32 5.0, %v86_v47 }
 0x1de   :  { %v156_v7 = vmul.f32 5.0, %v87_v48  ;;  %v162_v9 = vsub.f32 %v154_v2, %v158_v1 }
 0x1df   :  { %335 = vpow2.f32 %v91_v54  ;;  %v88_v60 = vsub.f32 %v412_v3, %v84_v56  ;;  %v163_v6 = vsub.f32 %v155_v62, %v159_v61 }
 0x1e0   :  { %337 = vpow2.f32 %v93_v55  ;;  %v164_v11 = vsub.f32 %v156_v7, %v160_v4  ;;  %v194_v18 = vmul.f32 1.442695, %v162_v9  ;;  %v166_v30 = vmul.f32 %v162_v9, %v20_v58 }
 0x1e1   :  { %v95_v0 = vmul.f32 1.442695, %v88_v60  ;;  %v196_v10 = vmul.f32 1.442695, %v163_v6  ;;  %v157_v3 = vmul.f32 5.0, %v88_v60  ;;  %v167_v32 = vmul.f32 %v163_v6, %v21_v53 }
 0x1e2   :  { %v198_v19 = vmul.f32 1.442695, %v164_v11  ;;  %v168_v33 = vmul.f32 %v164_v11, %v22_v59 }
 0x1e3   :  { %339 = vpow2.f32 %v95_v0  ;;  %v165_v20 = vsub.f32 %v157_v3, %v161_v15 }
 0x1e4   :  { %341 = vpow2.f32 %v196_v10 }
 0x1e5   :  { %v334_v5 = vpop.eup %333  ;;  %343 = vpow2.f32 %v194_v18  ;;  %v200_v23 = vmul.f32 1.442695, %v165_v20  ;;  %v169_v34 = vmul.f32 %v165_v20, %v23_v8 }
 0x1e6   :  { %97 = vrot.lane.b32.xlu0 %v334_v5, %s373_s13  ;;  %v121_v21 = vmul.f32 %v334_v5, %v20_v58  ;;  %345 = vpow2.f32 %v198_v19 }
 0x1e7   :  { %347 = vpow2.f32 %v200_v23 }
 0x1e9   :  { %v336_v16 = vpop.eup %335 }
 0x1ea   :  { %v338_v17 = vpop.eup %337  ;;  %99 = vrot.lane.b32.xlu1 %v336_v16, %s373_s13  ;;  %v122_v24 = vmul.f32 %v336_v16, %v21_v53 }
 0x1eb   :  { %101 = vrot.lane.b32.xlu0 %v338_v17, %s373_s13  ;;  %v123_v25 = vmul.f32 %v338_v17, %v22_v59 }
 0x1ed   :  { %v340_v22 = vpop.eup %339 }
 0x1ee   :  { %103 = vrot.lane.b32.xlu1 %v340_v22, %s373_s13  ;;  %v124_v26 = vmul.f32 %v340_v22, %v23_v8  ;;  %v342_v27 = vpop.eup %341 }
 0x1ef   :  { %125 = vrot.lane.b32.xlu0 %v121_v21, %s373_s13  ;;  %v344_v28 = vpop.eup %343 }
 0x1f0   :  { %v346_v29 = vpop.eup %345 }
 0x1f1   :  { %v348_v31 = vpop.eup %347 }
 0x1f2   :  { %127 = vrot.lane.b32.xlu1 %v122_v24, %s373_s13 }
 0x1f3   :  { %129 = vrot.lane.b32.xlu0 %v123_v25, %s373_s13 }
 0x1f6   :  { %131 = vrot.lane.b32.xlu1 %v124_v26, %s373_s13 }
 0x1f7   :  { %204 = vrot.lane.b32.xlu0 %v342_v27, %s373_s13 }
 0x1fa   :  { %202 = vrot.lane.b32.xlu1 %v344_v28, %s373_s13 }
 0x1fb   :  { %206 = vrot.lane.b32.xlu0 %v346_v29, %s373_s13 }
 0x1fe   :  { %208 = vrot.lane.b32.xlu1 %v348_v31, %s373_s13 }
 0x1ff   :  { %170 = vrot.lane.b32.xlu0 %v166_v30, %s373_s13 }
 0x202   :  { %172 = vrot.lane.b32.xlu1 %v167_v32, %s373_s13 }
 0x203   :  { %174 = vrot.lane.b32.xlu0 %v168_v33, %s373_s13 }
 0x206   :  { %176 = vrot.lane.b32.xlu1 %v169_v34, %s373_s13 }
 0x258   :  { %v98_v35 = vpop.permute.xlu0 %97 }
 0x259   :  { %v105_v36 = vadd.f32 %v334_v5, %v98_v35 }
 0x25b   :  { %109 = vrot.lane.b32.xlu0 %v105_v36, %s374_s18 }
 0x25c   :  { %v100_v37 = vpop.permute.xlu1 %99 }
 0x25d   :  { %v106_v38 = vadd.f32 %v336_v16, %v100_v37  ;;  %v102_v39 = vpop.permute.xlu0 %101 }
 0x25e   :  { %v107_v40 = vadd.f32 %v338_v17, %v102_v39 }
 0x25f   :  { %111 = vrot.lane.b32.xlu1 %v106_v38, %s374_s18 }
 0x260   :  { %113 = vrot.lane.b32.xlu0 %v107_v40, %s374_s18  ;;  %v104_v41 = vpop.permute.xlu1 %103 }
 0x261   :  { %v126_v42 = vpop.permute.xlu0 %125  ;;  %v108_v43 = vadd.f32 %v340_v22, %v104_v41 }
 0x262   :  { %v133_v44 = vadd.f32 %v126_v42, %v121_v21  ;;  %v27_v21 = vshrl.u32 %v24_v12, 7 }
 0x263   :  { %115 = vrot.lane.b32.xlu1 %v108_v43, %s374_s18 }
 0x264   :  { %137 = vrot.lane.b32.xlu0 %v133_v44, %s374_s18  ;;  %v128_v45 = vpop.permute.xlu1 %127 }
 0x265   :  { %v130_v46 = vpop.permute.xlu0 %129  ;;  %v134_v47 = vadd.f32 %v128_v45, %v122_v24 }
 0x266   :  { %v135_v48 = vadd.f32 %v130_v46, %v123_v25 }
 0x267   :  { %139 = vrot.lane.b32.xlu1 %v134_v47, %s374_s18 }
 0x268   :  { %141 = vrot.lane.b32.xlu0 %v135_v48, %s374_s18  ;;  %v132_v49 = vpop.permute.xlu1 %131 }
 0x269   :  { %v205_v50 = vpop.permute.xlu0 %204  ;;  %v136_v51 = vadd.f32 %v132_v49, %v124_v26 }
 0x26a   :  { %v211_v52 = vadd.f32 %v342_v27, %v205_v50 }
 0x26b   :  { %143 = vrot.lane.b32.xlu1 %v136_v51, %s374_s18 }
 0x26c   :  { %216 = vrot.lane.b32.xlu0 %v211_v52, %s374_s18  ;;  %v203_v53 = vpop.permute.xlu1 %202 }
 0x26d   :  { %v207_v54 = vpop.permute.xlu0 %206  ;;  %v210_v55 = vadd.f32 %v344_v28, %v203_v53 }
 0x26e   :  { %v212_v56 = vadd.f32 %v346_v29, %v207_v54 }
 0x26f   :  { %214 = vrot.lane.b32.xlu1 %v210_v55, %s374_s18 }
 0x270   :  { %218 = vrot.lane.b32.xlu0 %v212_v56, %s374_s18  ;;  %v209_v57 = vpop.permute.xlu1 %208 }
 0x271   :  { %v171_v58 = vpop.permute.xlu0 %170  ;;  %v213_v59 = vadd.f32 %v348_v31, %v209_v57 }
 0x272   :  { %v477_v60 = vadd.f32 %v171_v58, %v166_v30  ;;  %v28_v30 = vadd.s32 8, %v27_v21 }
 0x273   :  { %220 = vrot.lane.b32.xlu1 %v213_v59, %s374_s18 }
 0x274   :  { %182 = vrot.lane.b32.xlu0 %v477_v60, %s374_s18  ;;  %v173_v61 = vpop.permute.xlu1 %172  ;;  %v289_v39 = vmul.u32 128, %v28_v30 }
 0x275   :  { %v175_v62 = vpop.permute.xlu0 %174  ;;  %v482_v63 = vadd.f32 %v173_v61, %v167_v32 }
 0x276   :  { %v484_v0 = vadd.f32 %v175_v62, %v168_v33  ;;  %v293_v49 = vadd.s32 %v289_v39, %v426_v13 }
 0x277   :  { %184 = vrot.lane.b32.xlu1 %v482_v63, %s374_s18 }
 0x278   :  { %186 = vrot.lane.b32.xlu0 %v484_v0, %s374_s18  ;;  %v177_v1 = vpop.permute.xlu1 %176  ;;  %vm297_vm4 = vcmp.lt.s32.totalorder %v293_v49, 32 }
 0x279   :  { %v490_v2 = vadd.f32 %v177_v1, %v169_v34  ;;  %vm518_vm6 = vmand %vm32_vm0, %vm297_vm4 }
 0x27b   :  { %188 = vrot.lane.b32.xlu1 %v490_v2, %s374_s18 }
 0x2cd   :  { %v110_v4 = vpop.permute.xlu0 %109 }
 0x2ce   :  { %v117_v5 = vadd.f32 %v110_v4, %v105_v36  ;;  %v29_v36 = vadd.s32 16, %v27_v21 }
 0x2d0   :  { %349 = vrcp.f32 %v117_v5 }
 0x2d1   :  { %v112_v6 = vpop.permute.xlu1 %111 }
 0x2d2   :  { %v118_v7 = vadd.f32 %v112_v6, %v106_v38  ;;  %v114_v8 = vpop.permute.xlu0 %113  ;;  %v288_v38 = vmul.u32 128, %v27_v21 }
 0x2d3   :  { %v119_v9 = vadd.f32 %v114_v8, %v107_v40 }
 0x2d4   :  { %351 = vrcp.f32 %v118_v7 }
 0x2d5   :  { %353 = vrcp.f32 %v119_v9  ;;  %v116_v10 = vpop.permute.xlu1 %115 }
 0x2d6   :  { %v138_v11 = vpop.permute.xlu0 %137  ;;  %v120_v15 = vadd.f32 %v116_v10, %v108_v43  ;;  %v30_v43 = vadd.s32 24, %v27_v21 }
 0x2d7   :  { %v145_v3 = vadd.f32 %v138_v11, %v133_v44  ;;  %v290_v44 = vmul.u32 128, %v29_v36 }
 0x2d8   :  { %355 = vrcp.f32 %v120_v15 }
 0x2d9   :  { %v140_v18 = vpop.permute.xlu1 %139 }
 0x2da   :  { %v350_v16 = vpop.eup %349  ;;  %v142_v19 = vpop.permute.xlu0 %141  ;;  %v146_v20 = vadd.f32 %v140_v18, %v134_v47 }
 0x2db   :  { %v494_v17 = vmul.f32 %v350_v16, %v145_v3  ;;  %v147_v23 = vadd.f32 %v142_v19, %v135_v48  ;;  %v292_v48 = vadd.s32 %v288_v38, %v426_v13 }
 0x2dd   :  { %357 = vlog2.f32 %v494_v17  ;;  %v144_v24 = vpop.permute.xlu1 %143  ;;  %v258_v47 = vsub.f32 1.0, %v494_v17  ;;  %vm296_vm3 = vcmp.lt.s32.totalorder %v292_v48, 32 }
 0x2de   :  { %v352_v22 = vpop.eup %351  ;;  %v217_v25 = vpop.permute.xlu0 %216  ;;  %v148_v31 = vadd.f32 %v144_v24, %v136_v51  ;;  %vm300_vm8 = vmand %vm32_vm0, %vm296_vm3 }
 0x2df   :  { %v354_v26 = vpop.eup %353  ;;  %v229_v27 = vmul.f32 %v352_v22, %v146_v20  ;;  %v223_v28 = vadd.f32 %v217_v25, %v211_v52  ;;  %v262_v62 = vmul.f32 0.05, %v258_v47 }
 0x2e0   :  { %v498_v29 = vmul.f32 %v354_v26, %v147_v23 }
 0x2e1   :  { %359 = vlog2.f32 %v229_v27  ;;  %v215_v32 = vpop.permute.xlu1 %214  ;;  %v259_v40 = vsub.f32 1.0, %v229_v27  ;;  %v266_v21 = vmul.f32 %v262_v62, %v258_v47 }
 0x2e2   :  { %361 = vlog2.f32 %v498_v29  ;;  %v219_v33 = vpop.permute.xlu0 %218  ;;  %v356_v34 = vpop.eup %355  ;;  %v222_v12 = vadd.f32 %v215_v32, %v210_v55  ;;  %v260_v54 = vsub.f32 1.0, %v498_v29  ;;  %v291_v55 = vmul.u32 128, %v30_v43 }
 0x2e3   :  { %363 = vlog2.f32 %v223_v28  ;;  %v224_v35 = vadd.f32 %v219_v33, %v212_v56  ;;  %v501_v37 = vmul.f32 %v356_v34, %v148_v31  ;;  %v263_v50 = vmul.f32 0.05, %v259_v40 }
 0x2e4   :  { %365 = vlog2.f32 %v222_v12  ;;  %v294_v56 = vadd.s32 %v290_v44, %v426_v13  ;;  %v264_v11 = vmul.f32 0.05, %v260_v54  ;;  %v295_v15 = vadd.s32 %v291_v55, %v426_v13 }
 0x2e5   :  { %367 = vlog2.f32 %v501_v37  ;;  %v221_v41 = vpop.permute.xlu1 %220  ;;  %v261_v1 = vsub.f32 1.0, %v501_v37  ;;  %v267_v5 = vmul.f32 %v263_v50, %v259_v40 }
 0x2e6   :  { %369 = vlog2.f32 %v224_v35  ;;  %v225_v42 = vadd.f32 %v221_v41, %v213_v59  ;;  %v183_v46 = vpop.permute.xlu0 %182  ;;  %vm298_vm5 = vcmp.lt.s32.totalorder %v294_v56, 32  ;;  %v268_v13 = vmul.f32 %v264_v11, %v260_v54 }
 0x2e7   :  { %v358_v45 = vpop.eup %357  ;;  %v265_v23 = vmul.f32 0.05, %v261_v1  ;;  %vm299_vm7 = vcmp.lt.s32.totalorder %v295_v15, 32  ;;  %vm302_vm9 = vmand %vm32_vm0, %vm298_vm5 }
 0x2e8   :  { %371 = vlog2.f32 %v225_v42  ;;  %v235_v53 = vmul.f32 0.6931472, %v358_v45  ;;  %vm303_vm10 = vmand %vm32_vm0, %vm299_vm7 }
 0x2e9   :  { %v185_v51 = vpop.permute.xlu1 %184 }
 0x2ea   :  { %v191_v59 = vadd.f32 %v185_v51, %v482_v63  ;;  %v187_v8 = vpop.permute.xlu0 %186  ;;  %v242_v10 = vsub.f32 0.0, %v235_v53  ;;  %v190_v63 = vadd.f32 %v183_v46, %v477_v60 }
 0x2eb   :  { %v360_v52 = vpop.eup %359  ;;  %v192_v24 = vadd.f32 %v187_v8, %v484_v0  ;;  %v269_v0 = vmul.f32 %v265_v23, %v261_v1 }
 0x2ec   :  { %v362_v57 = vpop.eup %361  ;;  %v237_v58 = vmul.f32 0.6931472, %v360_v52  ;;  %v270_v31 = vmul.f32 %v266_v21, %v242_v10 }
 0x2ed   :  { %v364_v61 = vpop.eup %363  ;;  %v239_v6 = vmul.f32 0.6931472, %v362_v57  ;;  %v189_v19 = vpop.permute.xlu1 %188 }
 0x2ee   :  { %v243_v4 = vsub.f32 0.0, %v237_v58  ;;  %v249_v7 = vmul.f32 0.6931472, %v364_v61  ;;  %v366_v9 = vpop.eup %365  ;;  %v193_v32 = vadd.f32 %v189_v19, %v490_v2 }
 0x2ef   :  { %v368_v3 = vpop.eup %367  ;;  %v247_v16 = vmul.f32 0.6931472, %v366_v9  ;;  %v244_v25 = vsub.f32 0.0, %v239_v6 }
 0x2f0   :  { %v271_v17 = vmul.f32 %v267_v5, %v243_v4  ;;  %v255_v18 = vsub.f32 %v249_v7, %v191_v59  ;;  %v370_v20 = vpop.eup %369  ;;  %v241_v22 = vmul.f32 0.6931472, %v368_v3 }
 0x2f1   :  { %v251_v26 = vmul.f32 0.6931472, %v370_v20  ;;  %v254_v27 = vsub.f32 %v247_v16, %v190_v63  ;;  %v272_v37 = vmul.f32 %v268_v13, %v244_v25 }
 0x2f2   :  { %v275_v28 = vmul.f32 0.2, %v255_v18  ;;  %v372_v29 = vpop.eup %371  ;;  %v245_v30 = vsub.f32 0.0, %v241_v22 }
 0x2f3   :  { %v253_v60 = vmul.f32 0.6931472, %v372_v29  ;;  %v274_v33 = vmul.f32 0.2, %v254_v27  ;;  %v256_v12 = vsub.f32 %v251_v26, %v192_v24 }
 0x2f4   :  { %v279_v34 = vadd.f32 %v275_v28, %v271_v17  ;;  %v273_v39 = vmul.f32 %v269_v0, %v245_v30 }
 0x2f5   :  { %v278_v36 = vadd.f32 %v274_v33, %v270_v31  ;;  %v276_v2 = vmul.f32 0.2, %v256_v12  ;;  %v257_v38 = vsub.f32 %v253_v60, %v193_v32 }
 0x2f6   :  { %v305_v43 = vsel %vm518_vm6, %v279_v34, 0.0 }
 0x2f7   :  { %v280_v40 = vadd.f32 %v276_v2, %v272_v37  ;;  %v277_v41 = vmul.f32 0.2, %v257_v38  ;;  %v304_v42 = vsel %vm300_vm8, %v278_v36, 0.0 }
 0x2f8   :  { %v308_v44 = vadd.f32 %v305_v43, %v304_v42 }
 0x2f9   :  { %v281_v45 = vadd.f32 %v277_v41, %v273_v39  ;;  %v306_v46 = vsel %vm302_vm9, %v280_v40, 0.0 }
 0x2fa   :  { %v309_v47 = vadd.f32 %v308_v44, %v306_v46 }
 0x2fb   :  { %v307_v48 = vsel %vm303_vm10, %v281_v45, 0.0 }
 0x2fc   :  { %v310_v49 = vadd.f32 %v309_v47, %v307_v48 }
 0x2fe   :  { %311 = vadd.xlane.f32.xlu0 %v310_v49 }
 0x38b   :  { %v312_v50 = vpop.xlane.xlu0 %311 }
 0x38c   :  { %v313_v51 = vrot.slane %v312_v50, 4 }
 0x38e   :  { %v314_v52 = vadd.f32 %v313_v51, %v312_v50 }
 0x390   :  { %v315_v53 = vrot.slane %v314_v52, 2 }
 0x392   :  { %v316_v54 = vadd.f32 %v315_v53, %v314_v52 }
 0x394   :  { %v317_v55 = vrot.slane %v316_v54, 1 }
 0x396   :  { %v318_v56 = vadd.f32 %v317_v55, %v316_v54 }
 0x398   :  { %326 = vpush %v318_v56 }
 0x3c9   :  { %s327_s1 = spop %326 }
 0x3ca   :  { %v320_v57 = vstv %s327_s1 }
 0x3cb   :  { %321 = vst [vmem:[%s537_s2] sm:$0xff] %v320_v57 }

</bundles_post_ra>
